<compile_context>
chip_gen: v6e
topology: v6e:2x2x1
jax: 0.10.0
libtpu: 0.0.40
codegen_flags: <defaults>
</compile_context>

<pallas_src>
import functools

import jax
import jax.numpy as jnp
from jax import lax
from jax.experimental import pallas as pl
from jax.experimental.pallas import tpu as pltpu


def _make_maxpool_s1_kernel(H, W, lanes):
    def kernel(x_ref, o_ref):
        x = x_ref[...]                                        # (TR, lanes)

        # Masks only vary along the lane axis: build them on a single sublane
        # and let jnp.where broadcast, instead of a full-tile iota + compares.
        idx = lax.broadcasted_iota(jnp.int32, (1, lanes), 1)
        last_col = (idx % W) == (W - 1)
        last_row = idx >= (H - 1) * W

        # Right neighbour: roll by lanes-1 (== roll left by 1) so x_r[k] = x[k+1].
        # Wrap positions coincide with last_col, which the mask replaces with x
        # itself (replicate padding).
        x_r = pltpu.roll(x, lanes - 1, 1)
        y = jnp.maximum(x, jnp.where(last_col, x, x_r))

        # Bottom neighbour: roll by lanes-W so y_d[k] = y[k+W]; wrap only touches
        # the last image row (and the lane-pad tail), both masked out.
        y_d = pltpu.roll(y, lanes - W, 1)
        o_ref[...] = jnp.maximum(y, jnp.where(last_row, y, y_d))

    return kernel


# Sublane packing multiple per element size (f32 -> 8, bf16 -> 16, int8 -> 32).
_SUBLANE_MULTIPLE = {4: 8, 2: 16, 1: 32}


def _pick_block_rows(rows, lanes, itemsize):
    """Dtype-aware row tile: ~4 MiB target, >=4 grid steps when rows allow."""
    sub = _SUBLANE_MULTIPLE.get(itemsize, 8)
    if rows <= sub:
        return rows                      # full-extent block is always layout-legal
    row_bytes = lanes * itemsize
    target_bytes = 4 << 20               # amortizes ~0.35 us per grid step
    tr = max(sub, (target_bytes // row_bytes) // sub * sub)
    tr = min(tr, pl.cdiv(rows, sub) * sub)
    # Prefer >= 4 grid steps so the pipeline has work to overlap and v7x's two
    # TensorCores (dimension_semantics="parallel") both get blocks.
    while tr > sub and pl.cdiv(rows, tr) < 4:
        tr = max(sub, (tr // 2 // sub) * sub)
    return tr


@functools.partial(jax.jit, static_argnames=("block_rows",))
def maxpool_stride1(x, block_rows=None):
    """Pallas TPU implementation of MaxPoolStride1 (NCHW in, NCHW out)."""
    B, C, H, W = x.shape
    rows, hw = B * C, H * W
    itemsize = jnp.dtype(x.dtype).itemsize

    # Lane-dense plane axis: pad H*W up to a multiple of 128 so stores are
    # unmasked full-lane vst's (biggest single measured lever); the pad tail is
    # sliced off after the call and never influences real outputs.
    lanes = pl.cdiv(hw, 128) * 128
    xf = x.reshape(rows, hw)
    if lanes != hw:
        xf = jnp.pad(xf, ((0, 0), (0, lanes - hw)))

    tr = _pick_block_rows(rows, lanes, itemsize) if block_rows is None else block_rows
    grid = (pl.cdiv(rows, tr),)          # ragged last block handled by Pallas

    tile_bytes = tr * lanes * itemsize
    # Double-buffered in + out tiles plus headroom; >= v6e/v7x default, raises
    # v5e's 16 MiB default, capped under v7x's 64 MiB physical VMEM.
    vmem_limit = min(48 << 20, max(32 << 20, 4 * tile_bytes + (8 << 20)))

    # TODO(synk): for very large planes (H*W beyond ~512K f32 elements) a
    # halo-tiled grid-over-H variant is needed to stay inside v7x's 64 MiB VMEM;
    # a full plane per sublane row is fine at Darknet feature-map sizes.

    out = pl.pallas_call(
        _make_maxpool_s1_kernel(H, W, lanes),
        out_shape=jax.ShapeDtypeStruct((rows, lanes), x.dtype),
        grid=grid,
        in_specs=[pl.BlockSpec((tr, lanes), lambda i: (i, 0))],
        out_specs=pl.BlockSpec((tr, lanes), lambda i: (i, 0)),
        compiler_params=pltpu.CompilerParams(
            dimension_semantics=("parallel",),
            vmem_limit_bytes=vmem_limit,
        ),
    )(xf)

    if lanes != hw:
        out = out[:, :hw]
    return out.reshape(B, C, H, W)


def maxpool_stride1_ref(x):
    """Pure-JAX reference: replicate pad right/bottom by 1, 2x2 max pool, stride 1."""
    xp = jnp.pad(x, ((0, 0), (0, 0), (0, 1), (0, 1)), mode="edge")
    return jnp.maximum(
        jnp.maximum(xp[:, :, :-1, :-1], xp[:, :, :-1, 1:]),
        jnp.maximum(xp[:, :, 1:, :-1], xp[:, :, 1:, 1:]),
    )


if __name__ == "__main__":
    key = jax.random.PRNGKey(0)
    k1, k2, k3, k4 = jax.random.split(key, 4)

    # Primary shape (NCHW, like the PyTorch module).
    x = jax.random.normal(k1, (2, 4, 16, 16), jnp.float32)
    out = jax.block_until_ready(maxpool_stride1(x))
    assert out.shape == x.shape, out.shape
    assert jnp.array_equal(out, maxpool_stride1_ref(x))

    # More (b, c) planes: exercises the cdiv-tiled, multi-step (>=4) pipelined grid.
    x2 = jax.random.normal(k2, (2, 32, 16, 16), jnp.float32)
    out2 = jax.block_until_ready(maxpool_stride1(x2))
    assert jnp.array_equal(out2, maxpool_stride1_ref(x2))

    # Non-128-multiple plane (13x13 = 169 -> lane-padded to 256) + ragged last block
    # (rows = 15 with an 8-row tile).
    x3 = jax.random.normal(k3, (3, 5, 13, 13), jnp.float32)
    out3 = jax.block_until_ready(maxpool_stride1(x3))
    assert jnp.array_equal(out3, maxpool_stride1_ref(x3))

    # bf16 path: dtype-aware sublane multiple of 16.
    x4 = jax.random.normal(k4, (2, 16, 16, 16), jnp.float32).astype(jnp.bfloat16)
    out4 = jax.block_until_ready(maxpool_stride1(x4))
    assert out4.dtype == jnp.bfloat16
    assert jnp.array_equal(out4, maxpool_stride1_ref(x4))

    print("KERNEL_OK")
</pallas_src>

<mosaic_0001>
module attributes {stable_mosaic.version = 11 : i64} {
  func.func @kernel(%arg0: i32, %arg1: memref<8x256xf32, #tpu.memory_space<vmem>>, %arg2: memref<8x256xf32, #tpu.memory_space<vmem>>) attributes {dimension_semantics = [#tpu.dimension_semantics<parallel>], iteration_bounds = array<i64: 1>, scalar_prefetch = 0 : i64, scratch_operands = 0 : i64, tpu.core_type = #tpu.core_type<tc>, window_params = [{transform_indices = @transform_0, window_bounds = array<i64: 8, 256>}, {transform_indices = @transform_1, window_bounds = array<i64: 8, 256>}]} {
    %c0 = arith.constant 0 : index
    %c0_0 = arith.constant 0 : index
    %0 = vector.load %arg1[%c0, %c0_0] : memref<8x256xf32, #tpu.memory_space<vmem>>, vector<8x256xf32>
    %1 = tpu.iota {dimensions = array<i32: 1>} : vector<1x256xi32>
    %c16_i32 = arith.constant 16 : i32
    %c0_i32 = arith.constant 0 : i32
    %2 = arith.cmpi eq, %c16_i32, %c0_i32 : i32
    %c1_i32 = arith.constant 1 : i32
    %3 = arith.select %2, %c1_i32, %c16_i32 : i32
    %4 = vector.broadcast %3 : i32 to vector<1x256xi32>
    %5 = arith.remsi %1, %4 : vector<1x256xi32>
    %c0_i32_1 = arith.constant 0 : i32
    %6 = vector.broadcast %c0_i32_1 : i32 to vector<1x256xi32>
    %7 = arith.cmpi ne, %5, %6 : vector<1x256xi32>
    %c0_i32_2 = arith.constant 0 : i32
    %8 = vector.broadcast %c0_i32_2 : i32 to vector<1x256xi32>
    %9 = arith.cmpi slt, %5, %8 : vector<1x256xi32>
    %c0_i32_3 = arith.constant 0 : i32
    %10 = arith.cmpi slt, %3, %c0_i32_3 : i32
    %11 = vector.broadcast %10 : i1 to vector<1x256xi1>
    %12 = vector.broadcast %11 : vector<1x256xi1> to vector<1x256xi1>
    %13 = arith.xori %9, %12 : vector<1x256xi1>
    %14 = arith.andi %13, %7 : vector<1x256xi1>
    %15 = vector.broadcast %3 : i32 to vector<1x256xi32>
    %16 = arith.addi %5, %15 : vector<1x256xi32>
    %17 = arith.select %14, %16, %5 : vector<1x256xi1>, vector<1x256xi32>
    %c15_i32 = arith.constant 15 : i32
    %18 = vector.broadcast %c15_i32 : i32 to vector<1x256xi32>
    %19 = arith.cmpi eq, %17, %18 : vector<1x256xi32>
    %c240_i32 = arith.constant 240 : i32
    %20 = vector.broadcast %c240_i32 : i32 to vector<1x256xi32>
    %21 = arith.cmpi sge, %1, %20 : vector<1x256xi32>
    %c255_i32 = arith.constant 255 : i32
    %22 = tpu.dynamic_rotate %0 by %c255_i32 dim 1 : vector<8x256xf32>, i32 -> vector<8x256xf32>
    %23 = vector.shape_cast %19 : vector<1x256xi1> to vector<1x256xi1>
    %24 = vector.broadcast %23 : vector<1x256xi1> to vector<8x256xi1>
    %25 = arith.select %24, %0, %22 : vector<8x256xi1>, vector<8x256xf32>
    %26 = arith.maximumf %0, %25 : vector<8x256xf32>
    %c240_i32_4 = arith.constant 240 : i32
    %27 = tpu.dynamic_rotate %26 by %c240_i32_4 dim 1 : vector<8x256xf32>, i32 -> vector<8x256xf32>
    %28 = vector.shape_cast %21 : vector<1x256xi1> to vector<1x256xi1>
    %29 = vector.broadcast %28 : vector<1x256xi1> to vector<8x256xi1>
    %30 = arith.select %29, %26, %27 : vector<8x256xi1>, vector<8x256xf32>
    %31 = arith.maximumf %26, %30 : vector<8x256xf32>
    %c0_5 = arith.constant 0 : index
    %c0_6 = arith.constant 0 : index
    %32 = vector.load %arg2[%c0_5, %c0_6] : memref<8x256xf32, #tpu.memory_space<vmem>>, vector<8x256xf32>
    tpu.vector_store %arg2[%c0_5, %c0_6], %31 {strides = array<i32>} : memref<8x256xf32, #tpu.memory_space<vmem>>, vector<8x256xf32>,
    return
  }
  func.func @transform_0(%arg0: i32) -> (i32, i32) {
    %c0_i32 = arith.constant 0 : i32
    %c0_i32_0 = arith.constant 0 : i32
    return %arg0, %c0_i32 : i32, i32
  }
  func.func @transform_1(%arg0: i32) -> (i32, i32) {
    %c0_i32 = arith.constant 0 : i32
    %c0_i32_0 = arith.constant 0 : i32
    return %arg0, %c0_i32 : i32, i32
  }
}

</mosaic_0001>

<bundles_post_ra>
// kernel: maxpool_stride1.1
= control target key start
LH: loop header
LB: loop body
LE: loop exit
PB: predicated region body
PF: predicated region fallthrough
CT: control target
= control target key end

     0   :  { %s79_s8 = smov 127   ;;  %v10_v2 = vlaneseq  ;;  %s80_s11 = smov 112   ;;  %s103_s0 = inlined_call_operand.vmem [shape: f32[8,256], index: 0, kind: input, shape index: {}]   ;;  %s104_s1 = inlined_call_operand.vmem [shape: f32[8,256], index: 1, kind: output, shape index: {}]  }
   0x1   :  { %v8_v0 = vld [vmem:[%s103_s0] sm:$0xff]  ;;  %v9_v1 = vld [vmem:[%s103_s0 + $0x8] sm:$0xff] }
   0x2   :  { %41 = vrot.lane.b32.xlu0 %v8_v0, %s79_s8  ;;  %v11_v3 = vand.u32 127, %v10_v2 }
   0x4   :  { %v12_v4 = vadd.s32 128, %v11_v3  ;;  %v17_v5 = vand.u32 15, %v11_v3  ;;  %vm45_vm0 = vcmp.lt.s32.totalorder %v11_v3, 127  ;;  %vm60_vm3 = vcmp.lt.s32.totalorder %v11_v3, 112 }
   0x6   :  { %43 = vrot.lane.b32.xlu0 %v9_v1, %s79_s8  ;;  %v24_v7 = vand.u32 15, %v12_v4  ;;  %vm37_vm1 = vcmp.eq.s32.totalorder %v17_v5, 15  ;;  %vm40_vm4 = vcmp.ge.s32.totalorder %v12_v4, 240 }
   0x8   :  { %vm38_vm2 = vcmp.eq.s32.totalorder %v24_v7, 15 }
  0x74   :  { %v42_v6 = vpop.permute.xlu0 %41 }
  0x78   :  { %v44_v8 = vpop.permute.xlu0 %43 }
  0x79   :  { %v46_v9 = vsel %vm45_vm0, %v42_v6, %v44_v8  ;;  %v47_v10 = vsel %vm45_vm0, %v44_v8, %v42_v6 }
  0x7a   :  { %v52_v11 = vsel %vm37_vm1, %v8_v0, %v46_v9  ;;  %v53_v13 = vsel %vm38_vm2, %v9_v1, %v47_v10 }
  0x7b   :  { %v54_v12 = vmax.f32 %v8_v0, %v52_v11  ;;  %v55_v14 = vmax.f32 %v9_v1, %v53_v13 }
  0x7d   :  { %56 = vrot.lane.b32.xlu1 %v54_v12, %s80_s11 }
  0x81   :  { %58 = vrot.lane.b32.xlu1 %v55_v14, %s80_s11 }
  0xef   :  { %v57_v15 = vpop.permute.xlu1 %56 }
  0xf3   :  { %v59_v16 = vpop.permute.xlu1 %58 }
  0xf4   :  { %v61_v17 = vsel %vm60_vm3, %v57_v15, %v59_v16  ;;  %v62_v18 = vsel %vm60_vm3, %v59_v16, %v57_v15 }
  0xf5   :  { %v68_v19 = vsel %vm40_vm4, %v55_v14, %v62_v18  ;;  %v69_v20 = vmax.f32 %v54_v12, %v61_v17 }
  0xf6   :  { %v70_v21 = vmax.f32 %v55_v14, %v68_v19 }
  0xf7   :  { %71 = vst [vmem:[%s104_s1] sm:$0xff] %v69_v20 }
  0xf8   :  { %72 = vst [vmem:[%s104_s1 + $0x8] sm:$0xff] %v70_v21 }

</bundles_post_ra>
